<compile_context>
chip_gen: v7x
topology: tpu7x:2x2x1
jax: 0.10.0
libtpu: 0.0.40
codegen_flags: <defaults>
</compile_context>

<pallas_src>
import functools

import jax
import jax.numpy as jnp
from jax.experimental import pallas as pl
from jax.experimental.pallas import tpu as pltpu

_NUM_CORES = 2                    # leading "parallel" grid axis (megacore on v7x)
_TM_MAX = 1024                    # max rows per tile
_VMEM_BUDGET = 8 * 1024 * 1024    # budget for 2 inputs x 2 pipeline buffers
_LANES = 128


def _round_up(x, m):
    return ((x + m - 1) // m) * m


def _cdiv(a, b):
    return -(-a // b)


def _choose_tm(batch, k):
    """Rows per tile for the row-mean kernel (multiple of 8, VMEM-bounded)."""
    lane_padded_k = _round_up(k, _LANES)           # VMEM tiles pad lanes to 128
    cap = _VMEM_BUDGET // (4 * 4 * lane_padded_k)  # 4 buffers x 4 B/elem
    cap = max(8, (cap // 8) * 8)
    cap = min(cap, _TM_MAX)
    rows_per_core = _cdiv(batch, _NUM_CORES)
    return max(8, min(cap, _round_up(rows_per_core, 8)))


def _choose_tm_rows(rows):
    """Rows per tile for the lane-dense (k == 1) kernel."""
    cap = _VMEM_BUDGET // (4 * 4 * _LANES)
    cap = max(8, (cap // 8) * 8)
    cap = min(cap, _TM_MAX)
    rows_per_core = _cdiv(rows, _NUM_CORES)
    return max(8, min(cap, _round_up(rows_per_core, 8)))


def _make_call(kernel, block_rows, block_cols, tiles_per_core):
    """Shared pallas_call factory: (cores, tiles) grid, resident outputs."""
    in_spec = pl.BlockSpec((block_rows, block_cols),
                           lambda c, t: (c * tiles_per_core + t, 0))
    out_spec = pl.BlockSpec((8, _LANES), lambda c, t: (c, 0))
    grid_spec = pltpu.PrefetchScalarGridSpec(
        num_scalar_prefetch=0,
        grid=(_NUM_CORES, tiles_per_core),
        in_specs=[in_spec, in_spec],
        out_specs=(out_spec, out_spec),
    )
    out_shape = (
        jax.ShapeDtypeStruct((_NUM_CORES * 8, _LANES), jnp.float32),
        jax.ShapeDtypeStruct((_NUM_CORES * 8, _LANES), jnp.float32),
    )
    return pl.pallas_call(
        kernel,
        out_shape=out_shape,
        grid_spec=grid_spec,
        compiler_params=pltpu.CompilerParams(
            dimension_semantics=("parallel", "arbitrary")),
    )


@functools.lru_cache(maxsize=None)
def _build_rowmean_call(k, tm, tiles_per_core, pos_positive):
    """k >= 2: per-row mean over the last (lane) axis, then the sign test."""
    inv_k = 1.0 / float(k)

    def kernel(theta_ref, pair_ref, loss_ref, cnt_ref):
        t = pl.program_id(1)

        @pl.when(t == 0)
        def _init():
            loss_ref[...] = jnp.zeros_like(loss_ref)
            cnt_ref[...] = jnp.zeros_like(cnt_ref)

        # mean(theta) - mean(pair) == mean(theta - pair): one cross-lane reduce.
        d = theta_ref[...] - pair_ref[...]                       # [tm, k]  (VPU)
        dmean = jnp.sum(d, axis=-1, keepdims=True) * inv_k       # [tm, 1]  (XLU)
        # satisfied  <=>  pos * (t - p) > 0 ; pos is a compile-time +/- 1.0.
        signed = dmean if pos_positive else -dmean
        unsat = (signed <= 0.0).astype(jnp.float32)              # [tm, 1]
        loss_ref[...] += jnp.sum(dmean * dmean * unsat)
        cnt_ref[...] += jnp.sum(unsat)

    return _make_call(kernel, tm, k, tiles_per_core)


@functools.lru_cache(maxsize=None)
def _build_elementwise_call(tm, tiles_per_core, pos_positive):
    """k == 1: fully lane-dense elementwise kernel on a (rows, 128) layout."""

    def kernel(theta_ref, pair_ref, loss_ref, cnt_ref):
        t = pl.program_id(1)

        @pl.when(t == 0)
        def _init():
            loss_ref[...] = jnp.zeros_like(loss_ref)
            cnt_ref[...] = jnp.zeros_like(cnt_ref)

        d = theta_ref[...] - pair_ref[...]                       # [tm, 128] (VPU)
        signed = d if pos_positive else -d
        unsat = (signed <= 0.0).astype(jnp.float32)
        loss_ref[...] += jnp.sum(d * d * unsat)
        cnt_ref[...] += jnp.sum(unsat)

    return _make_call(kernel, tm, _LANES, tiles_per_core)


def _pair_sce_pallas(pred_theta, pred_theta_pair, pos):
    """Runs the Pallas kernel; pos is a Python float in {+1.0, -1.0}."""
    theta = jnp.asarray(pred_theta, jnp.float32)
    pair = jnp.asarray(pred_theta_pair, jnp.float32)
    if theta.ndim == 1:
        theta = theta[:, None]
    if pair.ndim == 1:
        pair = pair[:, None]
    batch, k = theta.shape
    pos_positive = bool(pos > 0.0)

    if k == 1:
        # Lane-dense path: pack the batch vector 128 elements per lane row.
        flat_t = theta.reshape(-1)
        flat_p = pair.reshape(-1)
        rows = max(1, _cdiv(batch, _LANES))
        tm = _choose_tm_rows(rows)
        tiles_per_core = _cdiv(rows, _NUM_CORES * tm)
        rows_padded = _NUM_CORES * tiles_per_core * tm
        total = rows_padded * _LANES
        if total != batch:
            pad = total - batch
            # Padded entries satisfy pos*(theta-pair)=+1>0 -> contribute 0.
            flat_t = jnp.concatenate(
                [flat_t, jnp.full((pad,), pos, jnp.float32)])
            flat_p = jnp.concatenate([flat_p, jnp.zeros((pad,), jnp.float32)])
        theta2 = flat_t.reshape(rows_padded, _LANES)
        pair2 = flat_p.reshape(rows_padded, _LANES)
        call = _build_elementwise_call(tm, tiles_per_core, pos_positive)
        loss_parts, cnt_parts = call(theta2, pair2)
    else:
        tm = _choose_tm(batch, k)
        tiles_per_core = _cdiv(batch, _NUM_CORES * tm)
        batch_padded = _NUM_CORES * tiles_per_core * tm
        if batch_padded != batch:
            pad = batch_padded - batch
            # Padded rows: pos * (theta - pair) = +1 > 0 ("satisfied") -> 0.
            theta = jnp.concatenate(
                [theta, jnp.full((pad, k), pos, jnp.float32)], axis=0)
            pair = jnp.concatenate(
                [pair, jnp.zeros((pad, k), jnp.float32)], axis=0)
        call = _build_rowmean_call(k, tm, tiles_per_core, pos_positive)
        loss_parts, cnt_parts = call(theta, pair)

    # Each per-core (8,128) block holds that core's total in every element.
    loss = jnp.sum(loss_parts[::8, 0])
    count = jnp.sum(cnt_parts[::8, 0])
    return loss, count


def irt_pair_sce_loss(pred_theta, pred_theta_pair, id, id_pair, n, *args):
    """Faithful reimplementation of IRTPairSCELoss.forward.

    Returns (loss_sum, count) as jnp scalars on the kernel path, or
    (zeros_like(pred_theta), 0) on the early-return branch (as in the module).
    """
    # Scalar control flow, identical to the reference (true-division compare).
    # TODO(synk): `.item()` host sync of the reference is left to the caller.
    if id / n != id_pair / n:
        return jnp.zeros_like(pred_theta), 0
    pos = 1.0 if id > id_pair else -1.0
    return _pair_sce_pallas(pred_theta, pred_theta_pair, pos)


def _reference_pair_loss(pred_theta, pred_theta_pair, pos):
    """Pure-JAX reference mirroring the torch math for a given pos."""
    t = pred_theta if pred_theta.ndim > 1 else pred_theta[:, None]
    p = pred_theta_pair if pred_theta_pair.ndim > 1 else pred_theta_pair[:, None]
    t = jnp.mean(t.astype(jnp.float32), axis=1, keepdims=True)
    p = jnp.mean(p.astype(jnp.float32), axis=1, keepdims=True)
    sat = ((pos == 1.0) & (t > p)) | ((pos == -1.0) & (t < p))
    loss = jnp.where(sat, 0.0, (t - p) ** 2)
    cnt = jnp.where(sat, 0.0, 1.0)
    return jnp.sum(loss), jnp.sum(cnt)


if __name__ == "__main__":
    key = jax.random.PRNGKey(0)
    k1, k2 = jax.random.split(key)
    B, K = 8, 32
    pred_theta = jax.random.normal(k1, (B, K), dtype=jnp.float32)
    pred_theta_pair = jax.random.normal(k2, (B, K), dtype=jnp.float32)

    # 1) Early-return branch: 12/3 != 6/3.
    zeros, cnt0 = irt_pair_sce_loss(pred_theta, pred_theta_pair, 12, 6, 3)
    assert cnt0 == 0 and zeros.shape == pred_theta.shape

    # 2) Kernel path (true-division group equality -> id == id_pair, pos = -1).
    loss, count = irt_pair_sce_loss(pred_theta, pred_theta_pair, 7, 7, 3)
    jax.block_until_ready(loss)
    ref_loss, ref_count = _reference_pair_loss(pred_theta, pred_theta_pair, -1.0)
    assert abs(float(loss) - float(ref_loss)) <= 1e-5 * max(1.0, abs(float(ref_loss))), (
        float(loss), float(ref_loss))
    assert float(count) == float(ref_count), (float(count), float(ref_count))

    # 3) 1-D input path (exercises the lane-dense k == 1 kernel).
    loss1, count1 = irt_pair_sce_loss(pred_theta[:, 0], pred_theta_pair[:, 0], 7, 7, 3)
    jax.block_until_ready(loss1)
    ref_loss1, ref_count1 = _reference_pair_loss(
        pred_theta[:, 0], pred_theta_pair[:, 0], -1.0)
    assert abs(float(loss1) - float(ref_loss1)) <= 1e-5, (float(loss1), float(ref_loss1))
    assert float(count1) == float(ref_count1)

    # 4) pos = +1 specialization (unreachable through the wrapper because exact
    #    true-division equality forces id == id_pair; exercised directly).
    loss_p, count_p = _pair_sce_pallas(pred_theta, pred_theta_pair, 1.0)
    jax.block_until_ready(loss_p)
    ref_loss_p, ref_count_p = _reference_pair_loss(pred_theta, pred_theta_pair, 1.0)
    assert abs(float(loss_p) - float(ref_loss_p)) <= 1e-5 * max(1.0, abs(float(ref_loss_p)))
    assert float(count_p) == float(ref_count_p)

    # 5) pos = +1 on the lane-dense path as well.
    loss_p1, count_p1 = _pair_sce_pallas(pred_theta[:, 0], pred_theta_pair[:, 0], 1.0)
    jax.block_until_ready(loss_p1)
    ref_loss_p1, ref_count_p1 = _reference_pair_loss(
        pred_theta[:, 0], pred_theta_pair[:, 0], 1.0)
    assert abs(float(loss_p1) - float(ref_loss_p1)) <= 1e-5
    assert float(count_p1) == float(ref_count_p1)

    print("KERNEL_OK")
</pallas_src>

<mosaic_0001>
module attributes {stable_mosaic.version = 11 : i64} {
  func.func @kernel(%arg0: i32, %arg1: i32, %arg2: memref<8x32xf32, #tpu.memory_space<vmem>>, %arg3: memref<8x32xf32, #tpu.memory_space<vmem>>, %arg4: memref<8x128xf32, #tpu.memory_space<vmem>>, %arg5: memref<8x128xf32, #tpu.memory_space<vmem>>) attributes {dimension_semantics = [#tpu.dimension_semantics<parallel>, #tpu.dimension_semantics<arbitrary>], iteration_bounds = array<i64: 2, 1>, scalar_prefetch = 0 : i64, scratch_operands = 0 : i64, tpu.core_type = #tpu.core_type<tc>, window_params = [{transform_indices = @transform_0, window_bounds = array<i64: 8, 32>}, {transform_indices = @transform_1, window_bounds = array<i64: 8, 32>}, {transform_indices = @transform_2, window_bounds = array<i64: 8, 128>}, {transform_indices = @transform_3, window_bounds = array<i64: 8, 128>}]} {
    %c0_i32 = arith.constant 0 : i32
    %0 = arith.cmpi eq, %arg1, %c0_i32 : i32
    %1 = arith.extui %0 : i1 to i32
    %c0_i32_0 = arith.constant 0 : i32
    %2 = arith.cmpi ne, %1, %c0_i32_0 : i32
    scf.if %2 {
      %cst_17 = arith.constant 0.000000e+00 : f32
      %34 = vector.broadcast %cst_17 : f32 to vector<8x128xf32>
      %c0_18 = arith.constant 0 : index
      %c0_19 = arith.constant 0 : index
      %35 = vector.load %arg4[%c0_18, %c0_19] : memref<8x128xf32, #tpu.memory_space<vmem>>, vector<8x128xf32>
      tpu.vector_store %arg4[%c0_18, %c0_19], %34 {strides = array<i32>} : memref<8x128xf32, #tpu.memory_space<vmem>>, vector<8x128xf32>,
      %cst_20 = arith.constant 0.000000e+00 : f32
      %36 = vector.broadcast %cst_20 : f32 to vector<8x128xf32>
      %c0_21 = arith.constant 0 : index
      %c0_22 = arith.constant 0 : index
      %37 = vector.load %arg5[%c0_21, %c0_22] : memref<8x128xf32, #tpu.memory_space<vmem>>, vector<8x128xf32>
      tpu.vector_store %arg5[%c0_21, %c0_22], %36 {strides = array<i32>} : memref<8x128xf32, #tpu.memory_space<vmem>>, vector<8x128xf32>,
    } else {
    }
    %c0 = arith.constant 0 : index
    %c0_1 = arith.constant 0 : index
    %3 = vector.load %arg2[%c0, %c0_1] : memref<8x32xf32, #tpu.memory_space<vmem>>, vector<8x32xf32>
    %c0_2 = arith.constant 0 : index
    %c0_3 = arith.constant 0 : index
    %4 = vector.load %arg3[%c0_2, %c0_3] : memref<8x32xf32, #tpu.memory_space<vmem>>, vector<8x32xf32>
    %5 = arith.subf %3, %4 : vector<8x32xf32>
    %cst = arith.constant dense<0.000000e+00> : vector<8xf32>
    %6 = vector.multi_reduction <add>, %5, %cst [1] : vector<8x32xf32> to vector<8xf32>
    %7 = vector.shape_cast %6 : vector<8xf32> to vector<8x1xf32>
    %cst_4 = arith.constant 3.125000e-02 : f32
    %8 = vector.broadcast %cst_4 : f32 to vector<8x1xf32>
    %9 = arith.mulf %7, %8 : vector<8x1xf32>
    %cst_5 = arith.constant 0.000000e+00 : f32
    %10 = vector.broadcast %cst_5 : f32 to vector<8x1xf32>
    %11 = arith.subf %10, %9 : vector<8x1xf32>
    %cst_6 = arith.constant 0.000000e+00 : f32
    %12 = vector.broadcast %cst_6 : f32 to vector<8x1xf32>
    %13 = arith.cmpf ole, %11, %12 : vector<8x1xf32>
    %14 = arith.extui %13 : vector<8x1xi1> to vector<8x1xi32>
    %15 = arith.sitofp %14 : vector<8x1xi32> to vector<8x1xf32>
    %c0_7 = arith.constant 0 : index
    %c0_8 = arith.constant 0 : index
    %16 = vector.load %arg4[%c0_7, %c0_8] : memref<8x128xf32, #tpu.memory_space<vmem>>, vector<8x128xf32>
    %17 = arith.mulf %9, %9 : vector<8x1xf32>
    %18 = arith.mulf %17, %15 : vector<8x1xf32>
    %19 = vector.shape_cast %18 : vector<8x1xf32> to vector<1x8x1xf32>
    %cst_9 = arith.constant dense<0.000000e+00> : vector<1xf32>
    %20 = vector.multi_reduction <add>, %19, %cst_9 [1, 2] : vector<1x8x1xf32> to vector<1xf32>
    %21 = vector.shape_cast %20 : vector<1xf32> to vector<1x1x1xf32>
    %22 = vector.extract %21[0, 0, 0] : f32 from vector<1x1x1xf32>
    %23 = vector.broadcast %22 : f32 to vector<8x128xf32>
    %24 = arith.addf %16, %23 : vector<8x128xf32>
    %c0_10 = arith.constant 0 : index
    %c0_11 = arith.constant 0 : index
    %25 = vector.load %arg4[%c0_10, %c0_11] : memref<8x128xf32, #tpu.memory_space<vmem>>, vector<8x128xf32>
    tpu.vector_store %arg4[%c0_10, %c0_11], %24 {strides = array<i32>} : memref<8x128xf32, #tpu.memory_space<vmem>>, vector<8x128xf32>,
    %c0_12 = arith.constant 0 : index
    %c0_13 = arith.constant 0 : index
    %26 = vector.load %arg5[%c0_12, %c0_13] : memref<8x128xf32, #tpu.memory_space<vmem>>, vector<8x128xf32>
    %27 = vector.shape_cast %15 : vector<8x1xf32> to vector<1x8x1xf32>
    %cst_14 = arith.constant dense<0.000000e+00> : vector<1xf32>
    %28 = vector.multi_reduction <add>, %27, %cst_14 [1, 2] : vector<1x8x1xf32> to vector<1xf32>
    %29 = vector.shape_cast %28 : vector<1xf32> to vector<1x1x1xf32>
    %30 = vector.extract %29[0, 0, 0] : f32 from vector<1x1x1xf32>
    %31 = vector.broadcast %30 : f32 to vector<8x128xf32>
    %32 = arith.addf %26, %31 : vector<8x128xf32>
    %c0_15 = arith.constant 0 : index
    %c0_16 = arith.constant 0 : index
    %33 = vector.load %arg5[%c0_15, %c0_16] : memref<8x128xf32, #tpu.memory_space<vmem>>, vector<8x128xf32>
    tpu.vector_store %arg5[%c0_15, %c0_16], %32 {strides = array<i32>} : memref<8x128xf32, #tpu.memory_space<vmem>>, vector<8x128xf32>,
    return
  }
  func.func @transform_0(%arg0: i32, %arg1: i32) -> (i32, i32) {
    %c1_i32 = arith.constant 1 : i32
    %0 = arith.muli %arg0, %c1_i32 : i32
    %1 = arith.addi %0, %arg1 : i32
    %c0_i32 = arith.constant 0 : i32
    %c0_i32_0 = arith.constant 0 : i32
    return %1, %c0_i32 : i32, i32
  }
  func.func @transform_1(%arg0: i32, %arg1: i32) -> (i32, i32) {
    %c1_i32 = arith.constant 1 : i32
    %0 = arith.muli %arg0, %c1_i32 : i32
    %1 = arith.addi %0, %arg1 : i32
    %c0_i32 = arith.constant 0 : i32
    %c0_i32_0 = arith.constant 0 : i32
    return %1, %c0_i32 : i32, i32
  }
  func.func @transform_2(%arg0: i32, %arg1: i32) -> (i32, i32) {
    %c0_i32 = arith.constant 0 : i32
    %c0_i32_0 = arith.constant 0 : i32
    return %arg0, %c0_i32 : i32, i32
  }
  func.func @transform_3(%arg0: i32, %arg1: i32) -> (i32, i32) {
    %c0_i32 = arith.constant 0 : i32
    %c0_i32_0 = arith.constant 0 : i32
    return %arg0, %c0_i32 : i32, i32
  }
}

</mosaic_0001>

<bundles_post_ra>
// kernel: tpu_custom_call.1
= control target key start
LH: loop header
LB: loop body
LE: loop exit
PB: predicated region body
PF: predicated region fallthrough
CT: control target
= control target key end

     0   :  { %9 = vsyncpa [#allocation3], 0  ;;  %s1027_s0 = inlined_call_operand.hbm [shape: f32[16,32], index: 0, kind: input, shape index: {}]   ;;  %s1028_s1 = inlined_call_operand.hbm [shape: f32[16,32], index: 1, kind: input, shape index: {}]   ;;  %s1029_s2 = inlined_call_operand.hbm [shape: f32[16,128], index: 2, kind: output, shape index: {0}]   ;;  %s1030_s3 = inlined_call_operand.hbm [shape: f32[16,128], index: 3, kind: output, shape index: {1}]  }
   0x1   :  { %11 = vsyncpa [#allocation3 + $0x1], 0 }
   0x2   :  { %12 = vsyncpa [#allocation6], 0 }
   0x3   :  { %14 = vsyncpa [#allocation6 + $0x1], 0 }
   0x4   :  { %15 = vsyncpa [#allocation4], 0 }
   0x5   :  { %17 = vsyncpa [#allocation4 + $0x1], 0 }
   0x6   :  { %18 = vsyncpa [#allocation9], 0 }
   0x7   :  { %20 = vsyncpa [#allocation9 + $0x1], 0  ;;  %s772_s12 = smov 0   ;;  %s774_s13 = smov 0  }
   0x8   :  { %s776_s14 = smov 0   ;;  %s778_s15 = smov 0  }
   0x9   :  { %s780_s16 = smov 0   ;;  %s782_s17 = smov 0  }
   0xa LB: > { %s470_s18 = sadd.s32 4294967295, %s745_s17   ;;  %s471_s19 = sadd.s32 4294967294, %s745_s17   ;;  %s745_s17 = sphi %s782_s17, %s26_s17   ;;  %s741_s16 = sphi %s780_s16, %s1050_s16   ;;  %s737_s15 = sphi %s778_s15, %s1049_s15   ;;  %s733_s14 = sphi %s776_s14, %s1048_s14   ;;  %s729_s13 = sphi %s774_s13, %s1047_s13   ;;  %s725_s12 = sphi %s772_s12, %s1046_s12  }
   0xb   : > { %s38_s20 = sadd.s32 1, %s741_s16  ;;  %s47_s21 = sadd.s32 1, %s733_s14 }
   0xc   : > { %p40_p0 = scmp.ge.s32.totalorder %s38_s20, 2  ;;  %p54_p1 = scmp.ne.s32.totalorder %s733_s14, %s729_s13 }
   0xd   : > { %p55_p2 = scmp.eq.s32.totalorder %s745_s17, 0  ;;  %p60_p3 = scmp.ne.s32.totalorder %s729_s13, %s725_s12 }
   0xe   : > { %s1052_s20 = smov (%p40_p0, %s38_s20), 0  ;;  %p61_p5 = scmp.eq.s32.totalorder %s470_s18, 0 }
   0xf   : > { %p813_p4 = por %p55_p2, %p54_p1  ;;  %s44_s23 = ssub.s32 %s741_s16, %s1052_s20 }
  0x10   : > { %p112_p6 = scmp.eq.s32.totalorder %s470_s18, 1  ;;  %p45_p7 = scmp.eq.s32.totalorder %s44_s23, 0 }
  0x11   : > { %p819_p8 = por %p61_p5, %p60_p3  ;;  %p118_p10 = scmp.eq.s32.totalorder %s471_s19, 1 }
  0x12   : > { %p823_p9 = por %p112_p6, %p54_p1  ;;  %p516_p13 = scmp.lt.s32.totalorder %s745_s17, 2 }
  0x13   : > { %s1034_s24 = scalar_select %p819_p8, 1, 0 }
  0x14   : > { %s1035_s25 = scalar_select %p823_p9, 1, 0 }
  0x15   : > { %s828_s26 = scalar_select %p45_p7, %s733_s14, %s47_s21  }
  0x16   : > { %p830_p11 = por %p118_p10, %p60_p3  ;;  %s837_s28 = sand.u32 1, %s733_s14  }
  0x17   : > { %s474_s29 = sshll.u32 %s837_s28, 3  ;;  %s475_s30 = sshll.u32 %s741_s16, 7 }
  0x18   : > { %s1036_s27 = scalar_select %p830_p11, 1, 0 }
  0x19   : > { %s846_s6 = scalar_lea.hbm %s1027_s0, %s475_s30  ;;  %s168_s7 = scalar_lea.vmem [#allocation2], %s474_s29 }
  0x1a   : > { %s176_s8 = sshll.u32 %s168_s7, 4  ;;  %p854_p0 = pnand %p516_p13, %p813_p4  ;;  %s850_s8 = int_to_ptr.vmem [resolvable:$true] %s176_s8 }
  0x1b   : > { %s165_s10 = scalar_lea.sflag [#allocation3], %s837_s28  ;;  %s567_s11 = scalar_lea.hbm %s846_s6, 128 }
  0x1c   : > { %p568_p3 = scmp.ne.s32.totalorder %s846_s6, %s567_s11  ;;  %p569_p5 = pneg %p854_p0 }
  0x1d   : > { %s572_s21 = scalar_lea.hbm %s1027_s0, 256  ;;  %p573_p4 = scmp.lt.u32.totalorder %s846_s6, %s1027_s0 }
  0x1e   : > { %p570_p6 = pnand %p569_p5, %p568_p3  ;;  %p574_p10 = scmp.lt.u32.totalorder %s572_s21, %s567_s11 }
  0x1f   : > { %p576_p12 = scmp.lt.u32.totalorder %s567_s11, %s846_s6 }
  0x20   : > { %p571_p7 = pneg %p570_p6  ;;  %p575_p13 = por %p574_p10, %p573_p4 }
  0x22   : > { %p577_p1 = por %p576_p12, %p575_p13 }
  0x24   : > { %p578_p2 = pnand %p577_p1, %p571_p7 }
  0x26   : > { %581 = shalt.err (!%p578_p2)
}
  0x27   : > { %s582_s4 = scalar_lea.vmem %s850_s8, 128  ;;  %s747_s5 = smov [#allocation2]  }
  0x28   : > { %p583_p3 = scmp.ne.s32.totalorder %s850_s8, %s582_s4  ;;  %s587_s7 = sshll.u32 %s747_s5, 4  ;;  %s588_s7 = int_to_ptr.vmem [resolvable:$false] %s587_s7 }
  0x29   : > { %s589_s18 = scalar_lea.vmem %s588_s7, 256  ;;  %p590_p9 = scmp.lt.s32.totalorder %s850_s8, %s588_s7 }
  0x2a   : > { %p585_p6 = pnand %p583_p3, %p569_p5  ;;  %p591_p4 = scmp.lt.s32.totalorder %s589_s18, %s582_s4 }
  0x2c   : > { %p586_p11 = pneg %p585_p6  ;;  %p592_p10 = por %p591_p4, %p590_p9 }
  0x2e   : > { %p593_p12 = pnand %p592_p10, %p586_p11 }
  0x30   : > { %596 = shalt.err (!%p593_p12)
}
  0x31   : > { %505 = dma.hbm_to_vmem [thread:$0]  (!%p854_p0), %s846_s6, 128, %s850_s8, %s165_s10  }
  0x32   : > { %p1038_p1 = scmp.lt.s32.totalorder %s745_s17, 3  ;;  %p1039_p2 = scmp.ge.s32.totalorder %s745_s17, 1 }
  0x33   : > { %s899_s22 = scalar_lea.hbm %s1028_s1, %s475_s30  ;;  %s187_s23 = scalar_lea.vmem [#allocation5], %s474_s29 }
  0x34   : > { %p890_p7 = pnand %p1039_p2, %p1038_p1  ;;  %s195_s4 = sshll.u32 %s187_s23, 4  ;;  %s196_s4 = int_to_ptr.vmem [resolvable:$true] %s195_s4 }
  0x35   : > { %s184_s6 = scalar_lea.sflag [#allocation6], %s837_s28  ;;  %s597_s8 = scalar_lea.hbm %s899_s22, 128 }
  0x36   : > { %s1040_s11 = scalar_select %p890_p7, 1, 0 }
  0x37   : > { %p598_p9 = scmp.ne.s32.totalorder %s899_s22, %s597_s8  ;;  %s602_s30 = scalar_lea.hbm %s1028_s1, 256 }
  0x38   : > { %p603_p3 = scmp.lt.u32.totalorder %s899_s22, %s1028_s1  ;;  %p604_p6 = scmp.lt.u32.totalorder %s602_s30, %s597_s8 }
  0x39   : > { %p600_p11 = pnand %p598_p9, %p569_p5  ;;  %p606_p10 = scmp.lt.u32.totalorder %s597_s8, %s899_s22 }
  0x3a   : > { %p605_p4 = por %p604_p6, %p603_p3 }
  0x3b   : > { %p601_p13 = pneg %p600_p11 }
  0x3c   : > { %p607_p12 = por %p606_p10, %p605_p4 }
  0x3e   : > { %p608_p1 = pnand %p607_p12, %p601_p13 }
  0x40   : > { %611 = shalt.err (!%p608_p1)
}
  0x41   : > { %s612_s28 = scalar_lea.vmem %s196_s4, 128  ;;  %s748_s29 = smov [#allocation5]  }
  0x42   : > { %p613_p2 = scmp.ne.s32.totalorder %s196_s4, %s612_s28  ;;  %s617_s19 = sshll.u32 %s748_s29, 4  ;;  %s618_s19 = int_to_ptr.vmem [resolvable:$false] %s617_s19 }
  0x43   : > { %s619_s21 = scalar_lea.vmem %s618_s19, 256  ;;  %p620_p8 = scmp.lt.s32.totalorder %s196_s4, %s618_s19 }
  0x44   : > { %p615_p9 = pnand %p613_p2, %p569_p5  ;;  %p621_p7 = scmp.lt.s32.totalorder %s619_s21, %s612_s28 }
  0x46   : > { %p616_p11 = pneg %p615_p9  ;;  %p622_p3 = por %p621_p7, %p620_p8 }
  0x48   : > { %p623_p6 = pnand %p622_p3, %p616_p11 }
  0x4a   : > { %626 = shalt.err (!%p623_p6)
}
  0x4b   : > { %508 = dma.hbm_to_vmem [thread:$0]  (!%p854_p0), %s899_s22, 128, %s196_s4, %s184_s6  }
  0x4c   : > { %p1041_p13 = scmp.ne.s32.totalorder %s1040_s11, 0 }
  0x4d   : > { %s926_s23 = sand.u32 (!%p1041_p13), 1, %s729_s13   ;;  %p1042_p8 = scmp.ne.s32.totalorder (!%p1041_p13), %s1034_s24, 0 }
  0x4e   : > { %204 = sbr.rel (%p1041_p13) target bundleno = 490 (0x1ea), region = 28  ;;  %s929_s8 = sshll.u32 (!%p1041_p13), %s926_s23, 3 }
  0x4f   : > { %s207_s10 = scalar_lea.sflag (!%p1041_p13), [#allocation3], %s926_s23  ;;  %s210_s5 = scalar_lea.vmem (!%p1041_p13), [#allocation2], %s929_s8 }
  0x55   : > { %708 = dma.done.wait (%p1042_p8), %s207_s10, 128  }
  0x56   : > { %710 = vsyncadd (%p1042_p8), %s207_s10, 4294967168  ;;  %s216_s9 = scalar_lea.sflag [#allocation6], %s926_s23  ;;  %s219_s11 = scalar_lea.vmem [#allocation5], %s929_s8 }
  0x57   : > { %712 = dma.done.wait (%p1042_p8), %s216_s9, 128  }
  0x58   : > { %714 = vsyncadd (%p1042_p8), %s216_s9, 4294967168  ;;  %v260_v0 = vld [vmem:[%s210_s5] sm:$0xff]  ;;  %v261_v1 = vld [vmem:[%s219_s11] sm:$0xff]  ;;  %vm263_vm0 = vcmask 261120   ;;  %vm275_vm1 = vcmask 7168   ;;  %v749_v8 = vmov 0.0  }
  0x59   : > { %v262_v2 = vsub.f32 %v260_v0, %v261_v1  ;;  %s486_s24 = sshll.u32 %s737_s15, 7  ;;  %s244_s22 = scalar_lea.vmem [#allocation7], %s929_s8 }
  0x5a   : > { %s322_s4 = sshll.u32 %s244_s22, 4  ;;  %s251_s30 = scalar_lea.vmem [#allocation8], %s929_s8  ;;  %s951_s4 = int_to_ptr.vmem [resolvable:$true] %s322_s4 }
  0x5b   : > { %v264_v3 = vsel %vm263_vm0, %v262_v2, 0.0  ;;  %s335_s7 = sshll.u32 %s251_s30, 4  ;;  %s949_s19 = scalar_lea.hbm %s1029_s2, %s486_s24  ;;  %s958_s7 = int_to_ptr.vmem [resolvable:$true] %s335_s7 }
  0x5c   : > { %265 = vadd.xlane.f32.xlu0 %v264_v3  ;;  %s956_s15 = scalar_lea.hbm %s1030_s3, %s486_s24  ;;  %s304_s8 = scalar_lea.sflag [#allocation4], %s926_s23 }
  0x5d   : > { %s627_s5 = scalar_lea.vmem %s951_s4, 128  ;;  %p1043_p5 = scmp.ne.s32.totalorder %s1035_s25, 0 }
  0x5e   : > { %p628_p0 = scmp.ne.s32.totalorder %s951_s4, %s627_s5  ;;  %s750_s9 = smov [#allocation7]  }
  0x5f   : > { %s631_s11 = sshll.u32 %s750_s9, 4  ;;  %s632_s11 = int_to_ptr.vmem [resolvable:$false] %s631_s11 }
  0x60   : > { %p629_p7 = pnand %p628_p0, %p1043_p5  ;;  %p634_p10 = scmp.lt.s32.totalorder %s951_s4, %s632_s11 }
  0x62   : > { %p630_p4 = pneg %p629_p7 }
  0xe9   : > { %v266_v4 = vpop.xlane.xlu0 %265 }
  0xea   : > { %v267_v5 = vmul.f32 0.03125, %v266_v4 }
  0xec   : > { %v268_v6 = vsub.f32 0.0, %v267_v5  ;;  %v273_v7 = vmul.f32 %v267_v5, %v267_v5 }
  0xee   : > { %vm269_vm2 = vcmp.le.f32.partialorder %v268_v6, 0.0 }
  0xef   : > { %v483_v9 = vsel %vm269_vm2, 1.0, %v749_v8 }
  0xf0   : > { %v290_v10 = vsel %vm275_vm1, %v483_v9, 0.0  ;;  %v274_v11 = vmul.f32 %v483_v9, %v273_v7 }
  0xf1   : > { %291 = vadd.xlane.f32.xlu1 %v290_v10 }
  0xf2   : > { %v276_v12 = vsel %vm275_vm1, %v274_v11, 0.0 }
  0xf3   : > { %277 = vadd.xlane.f32.xlu0 %v276_v12 }
 0x17e   : > { %v292_v13 = vpop.xlane.xlu1 %291 }
 0x17f   : > { %v293_v14 = vrot.slane %v292_v13, 4 }
 0x180   : > { %v278_v15 = vpop.xlane.xlu0 %277 }
 0x181   : > { %v294_v16 = vadd.f32 %v293_v14, %v292_v13  ;;  %v279_v17 = vrot.slane %v278_v15, 4 }
 0x183   : > { %v295_v18 = vrot.slane %v294_v16, 2  ;;  %v280_v19 = vadd.f32 %v279_v17, %v278_v15 }
 0x185   : > { %v296_v20 = vadd.f32 %v295_v18, %v294_v16  ;;  %v281_v21 = vrot.slane %v280_v19, 2 }
 0x187   : > { %v282_v22 = vadd.f32 %v281_v21, %v280_v19  ;;  %v297_v23 = vrot.slane %v296_v20, 1 }
 0x189   : > { %v283_v24 = vrot.slane %v282_v22, 1  ;;  %v298_v26 = vadd.f32 %v297_v23, %v296_v20 }
 0x18b   : > { %v284_v25 = vadd.f32 %v283_v24, %v282_v22 }
 0x18d   : > { %490 = vpush %v284_v25 }
 0x18e   : > { %492 = vpush %v298_v26 }
 0x1be   : > { %s491_s6 = spop %490 }
 0x1bf   : > { %v286_v27 = vstv %s491_s6  ;;  %s493_s18 = spop %492  ;;  %s633_s6 = scalar_lea.vmem %s632_s11, 256 }
 0x1c0   : > { %v300_v28 = vstv %s493_s18  ;;  %288 = vst [vmem:[%s244_s22] sm:$0xff] %v286_v27  ;;  %p635_p12 = scmp.lt.s32.totalorder %s633_s6, %s627_s5 }
 0x1c1   : > { %302 = vst [vmem:[%s251_s30] sm:$0xff] %v300_v28 }
 0x1c2   : > { %p636_p1 = por %p635_p12, %p634_p10 }
 0x1c4   : > { %p637_p2 = pnand %p636_p1, %p630_p4 }
 0x1c6   : > { %640 = shalt.err (!%p637_p2)
}
 0x1c7   : > { %s641_s24 = scalar_lea.hbm %s949_s19, 128  ;;  %s645_s18 = scalar_lea.hbm %s1029_s2, 256 }
 0x1c8   : > { %p642_p9 = scmp.ne.s32.totalorder %s949_s19, %s641_s24  ;;  %p646_p6 = scmp.lt.u32.totalorder %s949_s19, %s1029_s2 }
 0x1c9   : > { %p647_p13 = scmp.lt.u32.totalorder %s645_s18, %s641_s24  ;;  %p649_p0 = scmp.lt.u32.totalorder %s641_s24, %s949_s19 }
 0x1ca   : > { %p643_p11 = pnand %p642_p9, %p1043_p5 }
 0x1cb   : > { %p648_p8 = por %p647_p13, %p646_p6 }
 0x1cc   : > { %p644_p3 = pneg %p643_p11 }
 0x1cd   : > { %p650_p7 = por %p649_p0, %p648_p8 }
 0x1cf   : > { %p651_p4 = pnand %p650_p7, %p644_p3 }
 0x1d1   : > { %654 = shalt.err (!%p651_p4)
}
 0x1d2   : > { %498 = dma.vmem_to_hbm [thread:$0]  (%p1043_p5), %s951_s4, 128, %s949_s19, %s304_s8  }
 0x1d3   : > { %s309_s21 = scalar_lea.sflag [#allocation9], %s926_s23  ;;  %s655_s10 = scalar_lea.vmem %s958_s7, 128 }
 0x1d4   : > { %p656_p10 = scmp.ne.s32.totalorder %s958_s7, %s655_s10  ;;  %s751_s5 = smov [#allocation8]  }
 0x1d5   : > { %s659_s9 = sshll.u32 %s751_s5, 4  ;;  %s660_s9 = int_to_ptr.vmem [resolvable:$false] %s659_s9 }
 0x1d6   : > { %p657_p12 = pnand %p656_p10, %p1043_p5  ;;  %s661_s11 = scalar_lea.vmem %s660_s9, 256 }
 0x1d7   : > { %p662_p2 = scmp.lt.s32.totalorder %s958_s7, %s660_s9  ;;  %p663_p9 = scmp.lt.s32.totalorder %s661_s11, %s655_s10 }
 0x1d8   : > { %p658_p1 = pneg %p657_p12 }
 0x1d9   : > { %p664_p11 = por %p663_p9, %p662_p2 }
 0x1db   : > { %p665_p3 = pnand %p664_p11, %p658_p1 }
 0x1dd   : > { %668 = shalt.err (!%p665_p3)
}
 0x1de   : > { %s669_s23 = scalar_lea.hbm %s956_s15, 128  ;;  %s673_s8 = scalar_lea.hbm %s1030_s3, 256 }
 0x1df   : > { %p670_p6 = scmp.ne.s32.totalorder %s956_s15, %s669_s23  ;;  %p674_p0 = scmp.lt.u32.totalorder %s956_s15, %s1030_s3 }
 0x1e0   : > { %p675_p7 = scmp.lt.u32.totalorder %s673_s8, %s669_s23  ;;  %p677_p10 = scmp.lt.u32.totalorder %s669_s23, %s956_s15 }
 0x1e1   : > { %p671_p13 = pnand %p670_p6, %p1043_p5 }
 0x1e2   : > { %p676_p4 = por %p675_p7, %p674_p0 }
 0x1e3   : > { %p672_p8 = pneg %p671_p13 }
 0x1e4   : > { %p678_p12 = por %p677_p10, %p676_p4 }
 0x1e6   : > { %p679_p1 = pnand %p678_p12, %p672_p8 }
 0x1e8   : > { %682 = shalt.err (!%p679_p1)
}
 0x1e9   : > { %499 = dma.vmem_to_hbm [thread:$0]  (%p1043_p5), %s958_s7, 128, %s956_s15, %s309_s21  }
 0x1ea PF: > { %s347_s22 = sand.u32 1, %s725_s12   ;;  %p1044_p2 = scmp.ne.s32.totalorder %s1036_s27, 0 }
 0x1eb   : > { %p1045_p9 = scmp.ge.s32.totalorder %s745_s17, 2  ;;  %s348_s30 = scalar_lea.sflag [#allocation4], %s347_s22 }
 0x1ed   : > { %p510_p11 = pnand %p1045_p9, %p1044_p2 }
 0x1ef   : > { %716 = dma.done.wait (!%p510_p11), %s348_s30, 128  }
 0x1f0   : > { %718 = vsyncadd (!%p510_p11), %s348_s30, 4294967168  ;;  %s357_s18 = scalar_lea.sflag [#allocation9], %s347_s22 }
 0x1f1   : > { %720 = dma.done.wait (!%p510_p11), %s357_s18, 128  }
 0x1f2   : > { %722 = vsyncadd (!%p510_p11), %s357_s18, 4294967168  ;;  %s26_s17 = sadd.s32 1, %s745_s17   ;;  %s1046_s12 = smov %s729_s13 }
 0x1f3   : > { %p23_p3 = scmp.ge.s32.totalorder %s26_s17, 4   ;;  %s1047_s13 = smov %s733_s14 }
 0x1f4   : > { %s1048_s14 = smov %s828_s26  ;;  %s1049_s15 = smov %s741_s16 }
 0x1f5   : > { %s1050_s16 = smov %s1052_s20  ;;  %25 = sbr.rel (!%p23_p3) target bundleno = 10 (0xa), region = 107 }
 0x1fc   :  { %362 = vsyncpa [#allocation3], 1 }
 0x1fd   :  { %364 = vsyncpa [#allocation3 + $0x1], 1 }
 0x1fe   :  { %365 = vsyncpa [#allocation6], 1 }
 0x1ff   :  { %367 = vsyncpa [#allocation6 + $0x1], 1 }
 0x200   :  { %368 = vsyncpa [#allocation4], 1 }
 0x201   :  { %370 = vsyncpa [#allocation4 + $0x1], 1 }
 0x202   :  { %371 = vsyncpa [#allocation9], 1 }
 0x203   :  { %373 = vsyncpa [#allocation9 + $0x1], 1 }

</bundles_post_ra>
